<compile_context>
chip_gen: v7x
topology: tpu7x:2x2x1
jax: 0.10.0
libtpu: 0.0.40
codegen_flags: <defaults>
</compile_context>

<pallas_src>
import jax
import jax.numpy as jnp
import numpy as np
from jax.experimental import pallas as pl
from jax.experimental.pallas import tpu as pltpu

LANES = 128   # feature / time-point packing axis (lane axis)
SUBL = 8      # batch / row padding (sublane axis)


def odenet_kernel(x_ref,      # (NP, LANES)    padded input batch, features in lanes 0:2
                  w1_ref,     # (LANES, LANES) fc1 weight, zero-padded
                  g_ref,      # (LANES, LANES) packed G_i = P_i @ W3 in columns [2i:2i+2)
                  rows_ref,   # (SUBL, LANES)  row0 = b1, row1 = packed h_i = q_i@W3 + b3
                  out_ref):   # (NP, LANES)    out[:, 2i:2i+2) = fc3(y_i)
    # fc1: y0 = x @ W1 + b1.  Lanes >= 3 of y0 are exactly zero (zero-padded W1/b1).
    y0 = (jnp.dot(x_ref[...], w1_ref[...], preferred_element_type=jnp.float32)
          + rows_ref[0:1, :])
    # Every time point in one matmul:
    #   out[:, 2i:2i+2) = y0 @ (P_i @ W3) + (q_i @ W3 + b3)
    out_ref[...] = (jnp.dot(y0, g_ref[...], preferred_element_type=jnp.float32)
                    + rows_ref[1:2, :])


def odenet_forward(x, t, params):
    """x: (N, 2) f32, t: (T,) f32  ->  (T, N, 2) f32"""
    f32 = jnp.float32
    N = x.shape[0]
    T = t.shape[0]
    assert 2 * T <= LANES, "T too large to pack every time point into one 128-lane slab"
    NP = max(SUBL, ((N + SUBL - 1) // SUBL) * SUBL)

    t = t.astype(f32)

    # ---- host-side algebra: fuse ODEFunc, fold RK4, fold the time chain -----
    Wa, Wb, Wc = params["Wa"].astype(f32), params["Wb"].astype(f32), params["Wc"].astype(f32)
    ba, bb, bc = params["ba"].astype(f32), params["bb"].astype(f32), params["bc"].astype(f32)
    A = Wa @ Wb @ Wc                               # f(y) = y @ A + c (no activations)
    c = ba @ Wb @ Wc + bb @ Wc + bc
    d = A.shape[0]
    I = jnp.eye(d, dtype=f32)
    A2 = A @ A
    A3 = A2 @ A
    A4 = A3 @ A

    def make_Mv(dt):
        M = I + dt * A + (dt**2 / 2.0) * A2 + (dt**3 / 6.0) * A3 + (dt**4 / 24.0) * A4
        v = (dt * c + (dt**2 / 2.0) * (c @ A)
             + (dt**3 / 6.0) * (c @ A2) + (dt**4 / 24.0) * (c @ A3))
        return M, v

    dts = jnp.diff(t)                              # (T-1,)
    M_s, v_s = jax.vmap(make_Mv)(dts)              # (T-1, d, d), (T-1, d)

    # Cumulative propagators: y_i = y_0 @ P_i + q_i, then pre-multiply by fc3.
    W3 = params["W3"].astype(f32)
    b3 = params["b3"].astype(f32)
    G_list = [W3]                                  # G_0 = I @ W3
    h_list = [b3]                                  # h_0 = b3
    P = I
    q = jnp.zeros((d,), f32)
    for i in range(T - 1):                         # tiny 3x3 chain, trace-time loop
        P = P @ M_s[i]
        q = q @ M_s[i] + v_s[i]
        G_list.append(P @ W3)
        h_list.append(q @ W3 + b3)
    G_all = jnp.stack(G_list, axis=0)              # (T, d, 2)
    h_all = jnp.stack(h_list, axis=0)              # (T, 2)

    # ---- pad / pack into TPU-friendly tiles ---------------------------------
    x_p = jnp.zeros((NP, LANES), f32).at[:N, :x.shape[1]].set(x.astype(f32))

    W1 = params["W1"].astype(f32)
    w1_p = jnp.zeros((LANES, LANES), f32).at[:W1.shape[0], :W1.shape[1]].set(W1)

    # Column group [2i:2i+2) of g_p holds G_i; rows >= d and cols >= 2T stay zero.
    G_cols = jnp.transpose(G_all, (1, 0, 2)).reshape(d, 2 * T)   # [r, 2i+k] = G_i[r, k]
    g_p = jnp.zeros((LANES, LANES), f32).at[:d, :2 * T].set(G_cols)

    rows = jnp.zeros((SUBL, LANES), f32)
    rows = rows.at[0, :params["b1"].shape[0]].set(params["b1"].astype(f32))
    rows = rows.at[1, :2 * T].set(h_all.reshape(2 * T))

    out_padded = pl.pallas_call(
        odenet_kernel,
        out_shape=jax.ShapeDtypeStruct((NP, LANES), jnp.float32),
        in_specs=[
            pl.BlockSpec(memory_space=pltpu.MemorySpace.VMEM),   # x
            pl.BlockSpec(memory_space=pltpu.MemorySpace.VMEM),   # W1
            pl.BlockSpec(memory_space=pltpu.MemorySpace.VMEM),   # packed G
            pl.BlockSpec(memory_space=pltpu.MemorySpace.VMEM),   # b1 / packed h
        ],
        out_specs=pl.BlockSpec(memory_space=pltpu.MemorySpace.VMEM),
    )(x_p, w1_p, g_p, rows)

    # Unpack column groups back to (T, N, 2).
    out = out_padded[:N, :2 * T].reshape(N, T, 2)
    return jnp.transpose(out, (1, 0, 2))


def odenet_reference(x, t, params):
    """Plain-JAX reference: unfused layers, fixed-grid RK4 odeint semantics."""
    def lin(y, W, b):
        return y @ W + b

    def f(y):
        h = lin(y, params["Wa"], params["ba"])
        h = lin(h, params["Wb"], params["bb"])
        h = lin(h, params["Wc"], params["bc"])
        return h

    y = lin(x, params["W1"], params["b1"])
    outs = [lin(y, params["W3"], params["b3"])]
    for i in range(1, t.shape[0]):
        dt = t[i] - t[i - 1]
        k1 = f(y)
        k2 = f(y + 0.5 * dt * k1)
        k3 = f(y + 0.5 * dt * k2)
        k4 = f(y + dt * k3)
        y = y + (dt / 6.0) * (k1 + 2.0 * k2 + 2.0 * k3 + k4)
        outs.append(lin(y, params["W3"], params["b3"]))
    return jnp.stack(outs, axis=0)


def init_params(key):
    # Weights stored in (in, out) orientation; y = x @ W + b.
    ks = jax.random.split(key, 8)
    bnd1 = 1.0 / np.sqrt(2.0)
    bnd3 = 1.0 / np.sqrt(3.0)
    return {
        # fc1: Linear(2, 3) — PyTorch-style uniform init
        "W1": jax.random.uniform(ks[0], (2, 3), jnp.float32, -bnd1, bnd1),
        "b1": jax.random.uniform(ks[1], (3,), jnp.float32, -bnd1, bnd1),
        # ODEFunc: three Linear(3, 3), normal(0, 0.1) weights, zero bias
        "Wa": 0.1 * jax.random.normal(ks[2], (3, 3), jnp.float32),
        "ba": jnp.zeros((3,), jnp.float32),
        "Wb": 0.1 * jax.random.normal(ks[3], (3, 3), jnp.float32),
        "bb": jnp.zeros((3,), jnp.float32),
        "Wc": 0.1 * jax.random.normal(ks[4], (3, 3), jnp.float32),
        "bc": jnp.zeros((3,), jnp.float32),
        # fc3: Linear(3, 2)
        "W3": jax.random.uniform(ks[5], (3, 2), jnp.float32, -bnd3, bnd3),
        "b3": jax.random.uniform(ks[6], (2,), jnp.float32, -bnd3, bnd3),
    }


if __name__ == "__main__":
    key = jax.random.PRNGKey(0)
    kx, kp = jax.random.split(key)

    N, T = 8, 8
    x = jax.random.normal(kx, (N, 2), jnp.float32)
    t = jnp.linspace(0.0, 1.0, T).astype(jnp.float32)
    params = init_params(kp)

    out = odenet_forward(x, t, params)
    out = jax.block_until_ready(out)

    ref = odenet_reference(x, t, params)
    np.testing.assert_allclose(np.asarray(out), np.asarray(ref),
                               rtol=1e-5, atol=1e-5)

    print("KERNEL_OK")
</pallas_src>

<mosaic_0001>
module attributes {stable_mosaic.version = 11 : i64} {
  func.func @odenet_kernel(%arg0: memref<8x128xf32, #tpu.memory_space<vmem>>, %arg1: memref<128x128xf32, #tpu.memory_space<vmem>>, %arg2: memref<128x128xf32, #tpu.memory_space<vmem>>, %arg3: memref<8x128xf32, #tpu.memory_space<vmem>>, %arg4: memref<8x128xf32, #tpu.memory_space<vmem>>) attributes {dimension_semantics = [], scalar_prefetch = 0 : i64, scratch_operands = 0 : i64, tpu.core_type = #tpu.core_type<tc>} {
    %c0 = arith.constant 0 : index
    %c0_0 = arith.constant 0 : index
    %0 = vector.load %arg0[%c0, %c0_0] : memref<8x128xf32, #tpu.memory_space<vmem>>, vector<8x128xf32>
    %c0_1 = arith.constant 0 : index
    %c0_2 = arith.constant 0 : index
    %1 = vector.load %arg1[%c0_1, %c0_2] : memref<128x128xf32, #tpu.memory_space<vmem>>, vector<128x128xf32>
    %cst = arith.constant dense<0.000000e+00> : vector<8x128xf32>
    %2 = tpu.matmul %0, %1, %cst {dimension_numbers = #tpu.dot_dimension_numbers<[1], [0], [0], [1], [0, 0, 1, 1], [], []>} : vector<8x128xf32>, vector<128x128xf32>, vector<8x128xf32> -> vector<8x128xf32>
    %c0_3 = arith.constant 0 : index
    %c0_4 = arith.constant 0 : index
    %3 = vector.load %arg3[%c0_3, %c0_4] : memref<8x128xf32, #tpu.memory_space<vmem>>, vector<1x128xf32>
    %4 = vector.broadcast %3 : vector<1x128xf32> to vector<8x128xf32>
    %5 = arith.addf %2, %4 : vector<8x128xf32>
    %c0_5 = arith.constant 0 : index
    %c0_6 = arith.constant 0 : index
    %6 = vector.load %arg2[%c0_5, %c0_6] : memref<128x128xf32, #tpu.memory_space<vmem>>, vector<128x128xf32>
    %cst_7 = arith.constant dense<0.000000e+00> : vector<8x128xf32>
    %7 = tpu.matmul %5, %6, %cst_7 {dimension_numbers = #tpu.dot_dimension_numbers<[1], [0], [0], [1], [0, 0, 1, 1], [], []>} : vector<8x128xf32>, vector<128x128xf32>, vector<8x128xf32> -> vector<8x128xf32>
    %c1 = arith.constant 1 : index
    %c0_8 = arith.constant 0 : index
    %8 = vector.load %arg3[%c1, %c0_8] : memref<8x128xf32, #tpu.memory_space<vmem>>, vector<1x128xf32>
    %9 = vector.broadcast %8 : vector<1x128xf32> to vector<8x128xf32>
    %10 = arith.addf %7, %9 : vector<8x128xf32>
    %c0_9 = arith.constant 0 : index
    %c0_10 = arith.constant 0 : index
    %11 = vector.load %arg4[%c0_9, %c0_10] : memref<8x128xf32, #tpu.memory_space<vmem>>, vector<8x128xf32>
    tpu.vector_store %arg4[%c0_9, %c0_10], %10 {strides = array<i32>} : memref<8x128xf32, #tpu.memory_space<vmem>>, vector<8x128xf32>,
    return
  }
}

</mosaic_0001>

<bundles_post_ra>
// kernel: tpu_custom_call.1
= control target key start
LH: loop header
LB: loop body
LE: loop exit
PB: predicated region body
PF: predicated region fallthrough
CT: control target
= control target key end

     0   :  { %9 = vsyncpa [#allocation3], 0  ;;  %s624_s0 = inlined_call_operand.hbm [shape: f32[8,128], index: 0, kind: input, shape index: {}]   ;;  %s625_s1 = inlined_call_operand.hbm [shape: f32[128,128], index: 1, kind: input, shape index: {}]   ;;  %s626_s2 = inlined_call_operand.hbm [shape: f32[128,128], index: 2, kind: input, shape index: {}]   ;;  %s627_s3 = inlined_call_operand.vmem [shape: f32[8,128], index: 3, kind: input, shape index: {}]   ;;  %s628_s4 = inlined_call_operand.hbm [shape: f32[8,128], index: 4, kind: output, shape index: {}]  }
   0x1   :  { %10 = vsyncpa [#allocation6], 0 }
   0x2   :  { %11 = vsyncpa [#allocation4], 0  ;;  %s514_s15 = smov [#allocation5]   ;;  %s420_s19 = scalar_lea.hbm %s625_s1, 2048 }
   0x3   :  { %s27_s16 = sshll.u32 %s514_s15, 4  ;;  %p421_p0 = scmp.ne.s32.totalorder %s625_s1, %s420_s19  ;;  %s28_s16 = int_to_ptr.vmem [resolvable:$true] %s27_s16 }
   0x4   :  { %p424_p1 = scmp.lt.u32.totalorder %s420_s19, %s625_s1 }
   0x6   :  { %p426_p2 = pnand %p424_p1, %p421_p0 }
   0x8   :  { %429 = shalt.err (!%p426_p2)
}
   0x9   :  { %s430_s24 = scalar_lea.vmem %s28_s16, 2048  ;;  %p435_p4 = scmp.lt.s32.totalorder %s28_s16, %s28_s16 }
   0xa   :  { %p431_p3 = scmp.ne.s32.totalorder %s28_s16, %s430_s24  ;;  %p436_p5 = scmp.lt.s32.totalorder %s430_s24, %s430_s24 }
   0xc   :  { %p437_p6 = por %p436_p5, %p435_p4 }
   0xe   :  { %p438_p7 = pnand %p437_p6, %p431_p3 }
  0x10   :  { %441 = shalt.err (!%p438_p7)
}
  0x11   :  { %s515_s25 = smov 128   ;;  %s516_s26 = smov 8  }
  0x12   :  { %33 = dma.hbm_to_vmem [thread:$0]  %s625_s1, 2048, %s28_s16, [#allocation6], %s515_s25, %s515_s25, %s516_s26  }
  0x13   :  { %s517_s29 = smov [#allocation2]   ;;  %s518_s5 = smov [#allocation7]  }
  0x14   :  { %s18_s30 = sshll.u32 %s517_s29, 4  ;;  %s39_s6 = sshll.u32 %s518_s5, 4  ;;  %s19_s30 = int_to_ptr.vmem [resolvable:$true] %s18_s30  ;;  %s40_s6 = int_to_ptr.vmem [resolvable:$true] %s39_s6 }
  0x15   :  { %s442_s9 = scalar_lea.hbm %s624_s0, 128 }
  0x16   :  { %p443_p8 = scmp.ne.s32.totalorder %s624_s0, %s442_s9  ;;  %p446_p9 = scmp.lt.u32.totalorder %s442_s9, %s624_s0 }
  0x18   :  { %p448_p10 = pnand %p446_p9, %p443_p8 }
  0x1a   :  { %451 = shalt.err (!%p448_p10)
}
  0x1b   :  { %s452_s1 = scalar_lea.vmem %s19_s30, 128  ;;  %p457_p12 = scmp.lt.s32.totalorder %s19_s30, %s19_s30 }
  0x1c   :  { %p453_p11 = scmp.ne.s32.totalorder %s19_s30, %s452_s1  ;;  %p458_p13 = scmp.lt.s32.totalorder %s452_s1, %s452_s1 }
  0x1e   :  { %p459_p0 = por %p458_p13, %p457_p12 }
  0x20   :  { %p460_p1 = pnand %p459_p0, %p453_p11 }
  0x22   :  { %463 = shalt.err (!%p460_p1)
}
  0x23   :  { %21 = dma.hbm_to_vmem [thread:$0]  %s624_s0, 128, %s19_s30, [#allocation3]  }
  0x24   :  { %s464_s18 = scalar_lea.hbm %s626_s2, 2048 }
  0x25   :  { %p465_p2 = scmp.ne.s32.totalorder %s626_s2, %s464_s18  ;;  %p468_p3 = scmp.lt.u32.totalorder %s464_s18, %s626_s2 }
  0x27   :  { %p470_p4 = pnand %p468_p3, %p465_p2 }
  0x29   :  { %473 = shalt.err (!%p470_p4)
}
  0x2a   :  { %s474_s23 = scalar_lea.vmem %s40_s6, 2048  ;;  %p479_p6 = scmp.lt.s32.totalorder %s40_s6, %s40_s6 }
  0x2b   :  { %p475_p5 = scmp.ne.s32.totalorder %s40_s6, %s474_s23  ;;  %p480_p7 = scmp.lt.s32.totalorder %s474_s23, %s474_s23 }
  0x2d   :  { %p481_p8 = por %p480_p7, %p479_p6 }
  0x2f   :  { %p482_p9 = pnand %p481_p8, %p475_p5 }
  0x31   :  { %485 = shalt.err (!%p482_p9)
}
  0x32   :  { %45 = dma.hbm_to_vmem [thread:$0]  %s626_s2, 2048, %s40_s6, [#allocation6], %s515_s25, %s515_s25, %s516_s26  }
  0x33   :  { %508 = dma.done.wait [#allocation3], 128  }
  0x34   :  { %509 = vsyncadd [#allocation3], 4294967168 }
  0x35   :  { %510 = dma.done.wait [#allocation6], 4096  }
  0x36   :  { %511 = vsyncadd [#allocation6], 4294963200  ;;  %v519_v0 = vmov 0.0|0.0   ;;  %vm520_vm0 = vmmov 0   ;;  %v521_v1 = vmov 0.0   ;;  %v58_v2 = vld [vmem:[#allocation5] sm:$0xff] }
  0x37   :  { %363 = vmatprep.subr.bf16.mxu0 %v519_v0  ;;  %325 = vmatprep.mubr.msk.f32.mxu0 %vm520_vm0, %v521_v1  ;;  %v59_v3 = vld [vmem:[#allocation5 + $0x8] sm:$0xff]  ;;  %v60_v4 = vld [vmem:[#allocation5 + $0x10] sm:$0xff]  ;;  %v61_v6 = vld [vmem:[#allocation5 + $0x18] sm:$0xff]  ;;  %s522_s28 = smov [#allocation8]  }
  0x38   :  { %387 = vmatprep.subr.bf16.mxu1 %v519_v0  ;;  %360 = vmatprep.mubr.msk.f32.mxu1 %vm520_vm0, %v521_v1  ;;  %v364_v5 = vpack.c.bf16 %v59_v3, %v58_v2  ;;  %v367_v7 = vpack.c.bf16 %v61_v6, %v60_v4  ;;  %v62_v8 = vld [vmem:[#allocation5 + $0x20] sm:$0xff]  ;;  %v63_v9 = vld [vmem:[#allocation5 + $0x28] sm:$0xff]  ;;  %v151_v12 = vld [vmem:[#allocation7 + $0x10] sm:$0xff]  ;;  %s247_s29 = sshll.u32 %s522_s28, 4  ;;  %s248_s29 = int_to_ptr.vmem [resolvable:$true] %s247_s29 }
  0x39   :  { %v149_v10 = vld [vmem:[#allocation7] sm:$0xff]  ;;  %v150_v11 = vld [vmem:[#allocation7 + $0x8] sm:$0xff]  ;;  %v152_v13 = vld [vmem:[#allocation7 + $0x18] sm:$0xff]  ;;  %v370_v14 = vpack.c.bf16 %v63_v9, %v62_v8  ;;  %s486_s30 = scalar_lea.vmem %s248_s29, 128  ;;  %p491_p11 = scmp.lt.s32.totalorder %s248_s29, %s248_s29 }
  0x3a   :  { %365 = vmatpush3.bf16.msra.mxu0 %v364_v5  ;;  %v388_v15 = vpack.c.bf16 %v150_v11, %v149_v10  ;;  %v64_v16 = vld [vmem:[#allocation5 + $0x30] sm:$0xff]  ;;  %v65_v17 = vld [vmem:[#allocation5 + $0x38] sm:$0xff]  ;;  %v391_v18 = vpack.c.bf16 %v152_v13, %v151_v12  ;;  %v153_v19 = vld [vmem:[#allocation7 + $0x20] sm:$0xff]  ;;  %p487_p10 = scmp.ne.s32.totalorder %s248_s29, %s486_s30  ;;  %p492_p12 = scmp.lt.s32.totalorder %s486_s30, %s486_s30 }
  0x3b   :  { %366 = vmatprep.subr.bf16.mxu0 %v519_v0  ;;  %v154_v20 = vld [vmem:[#allocation7 + $0x28] sm:$0xff]  ;;  %v373_v21 = vpack.c.bf16 %v65_v17, %v64_v16  ;;  %v66_v22 = vld [vmem:[#allocation5 + $0x40] sm:$0xff]  ;;  %v155_v25 = vld [vmem:[#allocation7 + $0x30] sm:$0xff] }
  0x3c   :  { %389 = vmatpush3.bf16.msra.mxu1 %v388_v15  ;;  %v67_v23 = vld [vmem:[#allocation5 + $0x48] sm:$0xff]  ;;  %v394_v24 = vpack.c.bf16 %v154_v20, %v153_v19  ;;  %v156_v26 = vld [vmem:[#allocation7 + $0x38] sm:$0xff]  ;;  %v68_v28 = vld [vmem:[#allocation5 + $0x50] sm:$0xff]  ;;  %p493_p13 = por %p492_p12, %p491_p11 }
  0x3d   :  { %390 = vmatprep.subr.bf16.mxu1 %v519_v0  ;;  %v376_v27 = vpack.c.bf16 %v67_v23, %v66_v22  ;;  %v69_v29 = vld [vmem:[#allocation5 + $0x58] sm:$0xff]  ;;  %v397_v30 = vpack.c.bf16 %v156_v26, %v155_v25  ;;  %v157_v31 = vld [vmem:[#allocation7 + $0x40] sm:$0xff]  ;;  %v158_v32 = vld [vmem:[#allocation7 + $0x48] sm:$0xff] }
  0x3e   :  { %368 = vmatpush3.bf16.msra.mxu0 %v367_v7  ;;  %v379_v33 = vpack.c.bf16 %v69_v29, %v68_v28  ;;  %v70_v34 = vld [vmem:[#allocation5 + $0x60] sm:$0xff]  ;;  %v71_v35 = vld [vmem:[#allocation5 + $0x68] sm:$0xff]  ;;  %v400_v36 = vpack.c.bf16 %v158_v32, %v157_v31  ;;  %v159_v37 = vld [vmem:[#allocation7 + $0x50] sm:$0xff]  ;;  %p494_p0 = pnand %p493_p13, %p487_p10 }
  0x3f   :  { %369 = vmatprep.subr.bf16.mxu0 %v519_v0  ;;  %v160_v38 = vld [vmem:[#allocation7 + $0x58] sm:$0xff]  ;;  %v382_v39 = vpack.c.bf16 %v71_v35, %v70_v34  ;;  %v72_v40 = vld [vmem:[#allocation5 + $0x70] sm:$0xff]  ;;  %v161_v43 = vld [vmem:[#allocation7 + $0x60] sm:$0xff] }
  0x40   :  { %392 = vmatpush3.bf16.msra.mxu1 %v391_v18  ;;  %v73_v41 = vld [vmem:[#allocation5 + $0x78] sm:$0xff]  ;;  %v403_v42 = vpack.c.bf16 %v160_v38, %v159_v37  ;;  %v162_v44 = vld [vmem:[#allocation7 + $0x68] sm:$0xff]  ;;  %v163_v48 = vld [vmem:[#allocation7 + $0x70] sm:$0xff] }
  0x41   :  { %393 = vmatprep.subr.bf16.mxu1 %v519_v0  ;;  %v385_v45 = vpack.c.bf16 %v73_v41, %v72_v40  ;;  %v406_v46 = vpack.c.bf16 %v162_v44, %v161_v43  ;;  %v57_v47 = vld [vmem:[#allocation2] sm:$0xff] }
  0x42   :  { %371 = vmatpush3.bf16.msra.mxu0 %v370_v14  ;;  %v164_v49 = vld [vmem:[#allocation7 + $0x78] sm:$0xff] }
  0x43   :  { %372 = vmatprep.subr.bf16.mxu0 %v519_v0  ;;  %v409_v50 = vpack.c.bf16 %v164_v49, %v163_v48  ;;  %v257_v51 = vld [vmem:[%s627_s3] ss:$0 sm:$0xff]  ;;  %v258_v55 = vld [vmem:[%s627_s3 + $0x1] ss:$0 sm:$0xff] }
  0x44   :  { %395 = vmatpush3.bf16.msra.mxu1 %v394_v24 }
  0x45   :  { %396 = vmatprep.subr.bf16.mxu1 %v519_v0 }
  0x46   :  { %374 = vmatpush3.bf16.msra.mxu0 %v373_v21 }
  0x47   :  { %375 = vmatprep.subr.bf16.mxu0 %v519_v0 }
  0x48   :  { %398 = vmatpush3.bf16.msra.mxu1 %v397_v30 }
  0x49   :  { %399 = vmatprep.subr.bf16.mxu1 %v519_v0 }
  0x4a   :  { %377 = vmatpush3.bf16.msra.mxu0 %v376_v27 }
  0x4b   :  { %378 = vmatprep.subr.bf16.mxu0 %v519_v0 }
  0x4c   :  { %401 = vmatpush3.bf16.msra.mxu1 %v400_v36 }
  0x4d   :  { %402 = vmatprep.subr.bf16.mxu1 %v519_v0 }
  0x4e   :  { %380 = vmatpush3.bf16.msra.mxu0 %v379_v33 }
  0x4f   :  { %381 = vmatprep.subr.bf16.mxu0 %v519_v0 }
  0x50   :  { %404 = vmatpush3.bf16.msra.mxu1 %v403_v42 }
  0x51   :  { %405 = vmatprep.subr.bf16.mxu1 %v519_v0 }
  0x52   :  { %383 = vmatpush3.bf16.msra.mxu0 %v382_v39 }
  0x53   :  { %384 = vmatprep.subr.bf16.mxu0 %v519_v0 }
  0x54   :  { %407 = vmatpush3.bf16.msra.mxu1 %v406_v46 }
  0x55   :  { %408 = vmatprep.subr.bf16.mxu1 %v519_v0 }
  0x56   :  { %386 = vmatpush3.bf16.msra.mxu0 %v385_v45 }
  0x58   :  { %410 = vmatpush3.bf16.msra.mxu1 %v409_v50 }
  0x59   :  { %326 = vmatmul.mubr.f32.vlgmr.msra.gmra.mrb[0].mxu0 %v57_v47 }
 0x12c   :  { %v145_v52 = vpop.f32.mrb[0].mxu0 }
 0x12d   :  { %v146_v53 = vadd.f32 %v257_v51, %v145_v52  ;;  %v327_v54 = vpop.f32.mrb[1].mxu0 }
 0x12f   :  { %361 = vmatmul.mubr.f32.vlgmr.msra.gmra.mrb[0].mxu1 %v146_v53 }
 0x202   :  { %v236_v56 = vpop.f32.mrb[0].mxu1 }
 0x203   :  { %v237_v57 = vadd.f32 %v258_v55, %v236_v56  ;;  %v362_v58 = vpop.f32.mrb[1].mxu1 }
 0x205   :  { %240 = vst [vmem:[#allocation8] sm:$0xff] %v237_v57 }
 0x206   :  { %497 = shalt.err (!%p494_p0)
}
 0x207   :  { %s498_s7 = scalar_lea.hbm %s628_s4, 128 }
 0x208   :  { %p499_p1 = scmp.ne.s32.totalorder %s628_s4, %s498_s7  ;;  %p502_p2 = scmp.lt.u32.totalorder %s498_s7, %s628_s4 }
 0x20a   :  { %p504_p3 = pnand %p502_p2, %p499_p1 }
 0x20c   :  { %507 = shalt.err (!%p504_p3)
}
 0x20d   :  { %250 = dma.vmem_to_hbm [thread:$0]  %s248_s29, 128, %s628_s4, [#allocation4]  }
 0x20e   :  { %512 = dma.done.wait [#allocation4], 128  }
 0x20f   :  { %513 = vsyncadd [#allocation4], 4294967168 }
 0x210   :  { %254 = vsyncpa [#allocation3], 1 }
 0x211   :  { %255 = vsyncpa [#allocation6], 1 }
 0x212   :  { %256 = vsyncpa [#allocation4], 1 }

</bundles_post_ra>
